<compile_context>
chip_gen: v5e
topology: v5e:2x2
jax: 0.10.0
libtpu: 0.0.40
codegen_flags: <defaults>
</compile_context>

<pallas_src>
import math

import jax
import jax.numpy as jnp
from jax.experimental import pallas as pl
from jax.experimental.pallas import tpu as pltpu

# ---------------------------------------------------------------------------
# Small, TPU-friendly hyper-parameters consistent with Single_Flow.forward
# ---------------------------------------------------------------------------
INPUT_DIM = 32              # input_dim (must be even)
HIDDEN_DIM = 32             # hidden_dim
COUPLING_NUM = 4            # coupling_num
HIDDEN_LAYERS = 3           # hidden_layers -> (HIDDEN_LAYERS - 1) inner Linear+ReLU
BATCH = 16
BATCH_TILE = 8              # rows per grid step (multiple of 8 for sublane tiling)
HALF = INPUT_DIM // 2
LOG_2PI = math.log(2.0 * math.pi)

# Packed-parameter slab layout (one lane-dense f32 operand -> one DMA).
#   slab shape: (COUPLING_NUM, ROWS_PER_C, LANES), LANES = (HIDDEN_LAYERS+1)*HIDDEN_DIM.
#   Per coupling i, lane block b (width HIDDEN_DIM):
#     block 0,            rows 0:HALF        -> W0       (half -> hidden)
#     block 1..L-1,       rows 0:HIDDEN_DIM  -> WH[l]    (hidden -> hidden)
#     block L (last),     rows 0:HIDDEN_DIM  -> [Ws|Wt]  (fused scale/trans head)
#   row ROW_BIAS: matching biases, one HIDDEN_DIM-wide lane block per layer
#   row ROW_S (coupling 0 only): Scale-layer parameter s (INPUT_DIM lanes)
N_LANE_BLOCKS = HIDDEN_LAYERS + 1
LANES = N_LANE_BLOCKS * HIDDEN_DIM
ROW_BIAS = HIDDEN_DIM
ROW_S = HIDDEN_DIM + 1
ROWS_PER_C = ((ROW_S + 1 + 7) // 8) * 8        # 40: sublane-tile aligned

assert LANES == 128, "packing assumes (hidden_layers+1)*hidden_dim == 128 lanes"
assert 2 * HALF == HIDDEN_DIM, "fused [scale|trans] head assumes 2*half == hidden_dim"


def single_flow_kernel(x_ref, p_ref, loss_ref, h_ref):
    """One batch tile: all couplings unrolled + Scale layer + loss, fully fused."""
    half = HALF
    hid = HIDDEN_DIM

    x = x_ref[...]                      # (TB, D) f32
    xa = x[:, :half]                    # first half  -- carried separately so the
    xb = x[:, half:]                    # parity swap is a compile-time choice

    for i in range(COUPLING_NUM):
        odd = (i + 1) % 2               # PyTorch: odd_flag = (i + 1) % 2
        x2 = xb if odd else xa          # conditioning half (static parity)

        # --- net: Linear(half, hid) + ReLU, then (L-1) x [Linear(hid, hid) + ReLU]
        w0 = p_ref[i, 0:half, 0:hid]                          # (half, hid) f32
        b0 = p_ref[i, ROW_BIAS:ROW_BIAS + 1, 0:hid]           # (1, hid)
        h = jnp.dot(x2.astype(jnp.bfloat16), w0.astype(jnp.bfloat16),
                    preferred_element_type=jnp.float32) + b0
        h = jnp.maximum(h, 0.0)
        for l in range(HIDDEN_LAYERS - 1):
            c0 = (l + 1) * hid
            wl = p_ref[i, 0:hid, c0:c0 + hid]
            bl = p_ref[i, ROW_BIAS:ROW_BIAS + 1, c0:c0 + hid]
            h = jnp.dot(h.astype(jnp.bfloat16), wl.astype(jnp.bfloat16),
                        preferred_element_type=jnp.float32) + bl
            h = jnp.maximum(h, 0.0)

        # --- fused scale/trans head: one (hid, 2*half) matmul, then split
        c0 = HIDDEN_LAYERS * hid
        wst = p_ref[i, 0:hid, c0:c0 + hid]
        bst = p_ref[i, ROW_BIAS:ROW_BIAS + 1, c0:c0 + hid]
        st = jnp.dot(h.astype(jnp.bfloat16), wst.astype(jnp.bfloat16),
                     preferred_element_type=jnp.float32) + bst
        scale = jnp.tanh(st[:, :half])
        trans = st[:, half:]

        # forward direction (reverse=False): x1 = x1 * exp(scale) + trans
        if odd:
            xa = xa * jnp.exp(scale) + trans
        else:
            xb = xb * jnp.exp(scale) + trans

    x = jnp.concatenate((xa, xb), axis=1)            # single concat, once per tile

    # --- Scale layer + Gaussian prior log-prob + loss (reverse=False), all f32
    s = p_ref[0, ROW_S:ROW_S + 1, 0:INPUT_DIM]       # (1, D)
    h_out = jnp.exp(s) * x
    log_prob = jnp.sum(-0.5 * (LOG_2PI + h_out * h_out), axis=1, keepdims=True)
    log_det = jnp.sum(s, axis=1, keepdims=True)
    loss_ref[...] = -(log_prob + log_det)
    h_ref[...] = h_out


def single_flow_forward(x, slab, *, batch_tile=BATCH_TILE):
    B, D = x.shape
    assert D == INPUT_DIM and B % batch_tile == 0
    nb = B // batch_tile
    loss, h = pl.pallas_call(
        single_flow_kernel,
        grid=(nb,),
        in_specs=[
            pl.BlockSpec((batch_tile, D), lambda b: (b, 0)),
            # Constant index_map: the packed slab stays VMEM-resident across tiles.
            pl.BlockSpec((COUPLING_NUM, ROWS_PER_C, LANES), lambda b: (0, 0, 0)),
        ],
        out_specs=(
            pl.BlockSpec((batch_tile, 1), lambda b: (b, 0)),
            pl.BlockSpec((batch_tile, D), lambda b: (b, 0)),
        ),
        out_shape=(jax.ShapeDtypeStruct((B, 1), jnp.float32),
                   jax.ShapeDtypeStruct((B, D), jnp.float32)),
        compiler_params=pltpu.CompilerParams(
            dimension_semantics=("parallel",)),      # batch tiles split across TCs (v7x)
    )(x, slab)
    return loss[:, 0], h


def init_params(key):
    """Deterministic synthetic parameters in the PyTorch module's natural layout."""
    keys = jax.random.split(key, 9)
    sc = 0.1
    w0 = sc * jax.random.normal(keys[0], (COUPLING_NUM, HALF, HIDDEN_DIM), jnp.float32)
    b0 = sc * jax.random.normal(keys[1], (COUPLING_NUM, 1, HIDDEN_DIM), jnp.float32)
    wh = sc * jax.random.normal(
        keys[2], (COUPLING_NUM, HIDDEN_LAYERS - 1, HIDDEN_DIM, HIDDEN_DIM), jnp.float32)
    bh = sc * jax.random.normal(
        keys[3], (COUPLING_NUM, HIDDEN_LAYERS - 1, 1, HIDDEN_DIM), jnp.float32)
    ws = sc * jax.random.normal(keys[4], (COUPLING_NUM, HIDDEN_DIM, HALF), jnp.float32)
    bs = sc * jax.random.normal(keys[5], (COUPLING_NUM, 1, HALF), jnp.float32)
    wt = sc * jax.random.normal(keys[6], (COUPLING_NUM, HIDDEN_DIM, HALF), jnp.float32)
    bt = sc * jax.random.normal(keys[7], (COUPLING_NUM, 1, HALF), jnp.float32)
    s = sc * jax.random.normal(keys[8], (1, INPUT_DIM), jnp.float32)
    return (w0, b0, wh, bh, ws, bs, wt, bt, s)


def pack_params(params):
    """One-time layout plumbing: pack everything into a single lane-dense f32 slab."""
    w0, b0, wh, bh, ws, bs, wt, bt, s = params
    c0 = HIDDEN_LAYERS * HIDDEN_DIM
    slab = jnp.zeros((COUPLING_NUM, ROWS_PER_C, LANES), jnp.float32)
    slab = slab.at[:, :HALF, 0:HIDDEN_DIM].set(w0)
    for l in range(HIDDEN_LAYERS - 1):
        lo = (l + 1) * HIDDEN_DIM
        slab = slab.at[:, :HIDDEN_DIM, lo:lo + HIDDEN_DIM].set(wh[:, l])
        slab = slab.at[:, ROW_BIAS, lo:lo + HIDDEN_DIM].set(bh[:, l, 0])
    slab = slab.at[:, :HIDDEN_DIM, c0:c0 + HALF].set(ws)
    slab = slab.at[:, :HIDDEN_DIM, c0 + HALF:c0 + 2 * HALF].set(wt)
    slab = slab.at[:, ROW_BIAS, 0:HIDDEN_DIM].set(b0[:, 0])
    slab = slab.at[:, ROW_BIAS, c0:c0 + HALF].set(bs[:, 0])
    slab = slab.at[:, ROW_BIAS, c0 + HALF:c0 + 2 * HALF].set(bt[:, 0])
    slab = slab.at[0, ROW_S, 0:INPUT_DIM].set(s[0])
    return slab


def reference_forward(x, params):
    """Pure-JAX f32 reference reproducing Single_Flow.forward(x, reverse=False)."""
    w0, b0, wh, bh, ws, bs, wt, bt, s = params
    C = w0.shape[0]
    half = x.shape[1] // 2
    for i in range(C):
        odd = (i + 1) % 2
        if odd:
            x1, x2 = x[:, :half], x[:, half:]
        else:
            x2, x1 = x[:, :half], x[:, half:]
        h = jnp.maximum(x2 @ w0[i] + b0[i], 0.0)
        for l in range(wh.shape[1]):
            h = jnp.maximum(h @ wh[i, l] + bh[i, l], 0.0)
        scale = jnp.tanh(h @ ws[i] + bs[i])
        trans = h @ wt[i] + bt[i]
        x1 = x1 * jnp.exp(scale) + trans
        x = jnp.concatenate((x1, x2) if odd else (x2, x1), axis=1)
    h_out = jnp.exp(s) * x
    log_prob = jnp.sum(-0.5 * (LOG_2PI + h_out ** 2), axis=1)
    log_det = jnp.sum(s, axis=1)
    loss = -(log_prob + log_det)
    return loss, h_out


if __name__ == "__main__":
    key = jax.random.PRNGKey(0)
    kx, kp = jax.random.split(key)
    x = jax.random.normal(kx, (BATCH, INPUT_DIM), jnp.float32)
    params = init_params(kp)
    slab = pack_params(params)          # paid once at init, not per forward call

    loss, h = single_flow_forward(x, slab)
    jax.block_until_ready((loss, h))

    loss_ref, h_ref = reference_forward(x, params)
    assert loss.shape == (BATCH,) and h.shape == (BATCH, INPUT_DIM)
    # Tolerance accounts for bf16 MXU operands (f32 accumulation) vs the f32 reference.
    assert jnp.allclose(h, h_ref, rtol=2e-2, atol=2e-2), "h mismatch vs reference"
    assert jnp.allclose(loss, loss_ref, rtol=2e-2, atol=2e-2), "loss mismatch vs reference"
    print("KERNEL_OK")
</pallas_src>

<mosaic_0001>
module attributes {stable_mosaic.version = 11 : i64} {
  func.func @single_flow_kernel(%arg0: i32, %arg1: memref<8x32xf32, #tpu.memory_space<vmem>>, %arg2: memref<4x40x128xf32, #tpu.memory_space<vmem>>, %arg3: memref<8x1xf32, #tpu.memory_space<vmem>>, %arg4: memref<8x32xf32, #tpu.memory_space<vmem>>) attributes {dimension_semantics = [#tpu.dimension_semantics<parallel>], iteration_bounds = array<i64: 2>, scalar_prefetch = 0 : i64, scratch_operands = 0 : i64, tpu.core_type = #tpu.core_type<tc>, window_params = [{transform_indices = @transform_0, window_bounds = array<i64: 8, 32>}, {pipeline_mode = #tpu.pipeline_mode<synchronous>, transform_indices = @transform_1, window_bounds = array<i64: 4, 40, 128>}, {transform_indices = @transform_2, window_bounds = array<i64: 8, 1>}, {transform_indices = @transform_3, window_bounds = array<i64: 8, 32>}]} {
    %c0 = arith.constant 0 : index
    %c0_0 = arith.constant 0 : index
    %0 = vector.load %arg1[%c0, %c0_0] : memref<8x32xf32, #tpu.memory_space<vmem>>, vector<8x32xf32>
    %1 = vector.extract_strided_slice %0 {offsets = [0, 0], sizes = [8, 16], strides = [1, 1]} : vector<8x32xf32> to vector<8x16xf32>
    %2 = vector.extract_strided_slice %0 {offsets = [0, 16], sizes = [8, 16], strides = [1, 1]} : vector<8x32xf32> to vector<8x16xf32>
    %c0_1 = arith.constant 0 : index
    %c0_2 = arith.constant 0 : index
    %c0_3 = arith.constant 0 : index
    %3 = vector.load %arg2[%c0_1, %c0_2, %c0_3] : memref<4x40x128xf32, #tpu.memory_space<vmem>>, vector<1x16x32xf32>
    %4 = vector.shape_cast %3 : vector<1x16x32xf32> to vector<16x32xf32>
    %c0_4 = arith.constant 0 : index
    %c32 = arith.constant 32 : index
    %c0_5 = arith.constant 0 : index
    %5 = vector.load %arg2[%c0_4, %c32, %c0_5] : memref<4x40x128xf32, #tpu.memory_space<vmem>>, vector<1x1x32xf32>
    %6 = vector.shape_cast %5 : vector<1x1x32xf32> to vector<1x32xf32>
    %7 = arith.truncf %2 : vector<8x16xf32> to vector<8x16xbf16>
    %8 = arith.truncf %4 : vector<16x32xf32> to vector<16x32xbf16>
    %cst = arith.constant dense<0.000000e+00> : vector<8x32xf32>
    %9 = tpu.matmul %7, %8, %cst {dimension_numbers = #tpu.dot_dimension_numbers<[1], [0], [0], [1], [0, 0, 1, 1], [], []>} : vector<8x16xbf16>, vector<16x32xbf16>, vector<8x32xf32> -> vector<8x32xf32>
    %10 = vector.broadcast %6 : vector<1x32xf32> to vector<8x32xf32>
    %11 = arith.addf %9, %10 : vector<8x32xf32>
    %cst_6 = arith.constant 0.000000e+00 : f32
    %12 = vector.broadcast %cst_6 : f32 to vector<8x32xf32>
    %13 = arith.maximumf %11, %12 : vector<8x32xf32>
    %c0_7 = arith.constant 0 : index
    %c0_8 = arith.constant 0 : index
    %c32_9 = arith.constant 32 : index
    %14 = vector.load %arg2[%c0_7, %c0_8, %c32_9] : memref<4x40x128xf32, #tpu.memory_space<vmem>>, vector<1x32x32xf32>
    %15 = vector.shape_cast %14 : vector<1x32x32xf32> to vector<32x32xf32>
    %c0_10 = arith.constant 0 : index
    %c32_11 = arith.constant 32 : index
    %c32_12 = arith.constant 32 : index
    %16 = vector.load %arg2[%c0_10, %c32_11, %c32_12] : memref<4x40x128xf32, #tpu.memory_space<vmem>>, vector<1x1x32xf32>
    %17 = vector.shape_cast %16 : vector<1x1x32xf32> to vector<1x32xf32>
    %18 = arith.truncf %13 : vector<8x32xf32> to vector<8x32xbf16>
    %19 = arith.truncf %15 : vector<32x32xf32> to vector<32x32xbf16>
    %cst_13 = arith.constant dense<0.000000e+00> : vector<8x32xf32>
    %20 = tpu.matmul %18, %19, %cst_13 {dimension_numbers = #tpu.dot_dimension_numbers<[1], [0], [0], [1], [0, 0, 1, 1], [], []>} : vector<8x32xbf16>, vector<32x32xbf16>, vector<8x32xf32> -> vector<8x32xf32>
    %21 = vector.broadcast %17 : vector<1x32xf32> to vector<8x32xf32>
    %22 = arith.addf %20, %21 : vector<8x32xf32>
    %cst_14 = arith.constant 0.000000e+00 : f32
    %23 = vector.broadcast %cst_14 : f32 to vector<8x32xf32>
    %24 = arith.maximumf %22, %23 : vector<8x32xf32>
    %c0_15 = arith.constant 0 : index
    %c0_16 = arith.constant 0 : index
    %c64 = arith.constant 64 : index
    %25 = vector.load %arg2[%c0_15, %c0_16, %c64] : memref<4x40x128xf32, #tpu.memory_space<vmem>>, vector<1x32x32xf32>
    %26 = vector.shape_cast %25 : vector<1x32x32xf32> to vector<32x32xf32>
    %c0_17 = arith.constant 0 : index
    %c32_18 = arith.constant 32 : index
    %c64_19 = arith.constant 64 : index
    %27 = vector.load %arg2[%c0_17, %c32_18, %c64_19] : memref<4x40x128xf32, #tpu.memory_space<vmem>>, vector<1x1x32xf32>
    %28 = vector.shape_cast %27 : vector<1x1x32xf32> to vector<1x32xf32>
    %29 = arith.truncf %24 : vector<8x32xf32> to vector<8x32xbf16>
    %30 = arith.truncf %26 : vector<32x32xf32> to vector<32x32xbf16>
    %cst_20 = arith.constant dense<0.000000e+00> : vector<8x32xf32>
    %31 = tpu.matmul %29, %30, %cst_20 {dimension_numbers = #tpu.dot_dimension_numbers<[1], [0], [0], [1], [0, 0, 1, 1], [], []>} : vector<8x32xbf16>, vector<32x32xbf16>, vector<8x32xf32> -> vector<8x32xf32>
    %32 = vector.broadcast %28 : vector<1x32xf32> to vector<8x32xf32>
    %33 = arith.addf %31, %32 : vector<8x32xf32>
    %cst_21 = arith.constant 0.000000e+00 : f32
    %34 = vector.broadcast %cst_21 : f32 to vector<8x32xf32>
    %35 = arith.maximumf %33, %34 : vector<8x32xf32>
    %c0_22 = arith.constant 0 : index
    %c0_23 = arith.constant 0 : index
    %c96 = arith.constant 96 : index
    %36 = vector.load %arg2[%c0_22, %c0_23, %c96] : memref<4x40x128xf32, #tpu.memory_space<vmem>>, vector<1x32x32xf32>
    %37 = vector.shape_cast %36 : vector<1x32x32xf32> to vector<32x32xf32>
    %c0_24 = arith.constant 0 : index
    %c32_25 = arith.constant 32 : index
    %c96_26 = arith.constant 96 : index
    %38 = vector.load %arg2[%c0_24, %c32_25, %c96_26] : memref<4x40x128xf32, #tpu.memory_space<vmem>>, vector<1x1x32xf32>
    %39 = vector.shape_cast %38 : vector<1x1x32xf32> to vector<1x32xf32>
    %40 = arith.truncf %35 : vector<8x32xf32> to vector<8x32xbf16>
    %41 = arith.truncf %37 : vector<32x32xf32> to vector<32x32xbf16>
    %cst_27 = arith.constant dense<0.000000e+00> : vector<8x32xf32>
    %42 = tpu.matmul %40, %41, %cst_27 {dimension_numbers = #tpu.dot_dimension_numbers<[1], [0], [0], [1], [0, 0, 1, 1], [], []>} : vector<8x32xbf16>, vector<32x32xbf16>, vector<8x32xf32> -> vector<8x32xf32>
    %43 = vector.broadcast %39 : vector<1x32xf32> to vector<8x32xf32>
    %44 = arith.addf %42, %43 : vector<8x32xf32>
    %45 = vector.extract_strided_slice %44 {offsets = [0, 0], sizes = [8, 16], strides = [1, 1]} : vector<8x32xf32> to vector<8x16xf32>
    %46 = math.tanh %45 : vector<8x16xf32>
    %47 = vector.extract_strided_slice %44 {offsets = [0, 16], sizes = [8, 16], strides = [1, 1]} : vector<8x32xf32> to vector<8x16xf32>
    %48 = math.exp %46 : vector<8x16xf32>
    %49 = arith.mulf %1, %48 : vector<8x16xf32>
    %50 = arith.addf %49, %47 : vector<8x16xf32>
    %c1 = arith.constant 1 : index
    %c0_28 = arith.constant 0 : index
    %c0_29 = arith.constant 0 : index
    %51 = vector.load %arg2[%c1, %c0_28, %c0_29] : memref<4x40x128xf32, #tpu.memory_space<vmem>>, vector<1x16x32xf32>
    %52 = vector.shape_cast %51 : vector<1x16x32xf32> to vector<16x32xf32>
    %c1_30 = arith.constant 1 : index
    %c32_31 = arith.constant 32 : index
    %c0_32 = arith.constant 0 : index
    %53 = vector.load %arg2[%c1_30, %c32_31, %c0_32] : memref<4x40x128xf32, #tpu.memory_space<vmem>>, vector<1x1x32xf32>
    %54 = vector.shape_cast %53 : vector<1x1x32xf32> to vector<1x32xf32>
    %55 = arith.truncf %50 : vector<8x16xf32> to vector<8x16xbf16>
    %56 = arith.truncf %52 : vector<16x32xf32> to vector<16x32xbf16>
    %cst_33 = arith.constant dense<0.000000e+00> : vector<8x32xf32>
    %57 = tpu.matmul %55, %56, %cst_33 {dimension_numbers = #tpu.dot_dimension_numbers<[1], [0], [0], [1], [0, 0, 1, 1], [], []>} : vector<8x16xbf16>, vector<16x32xbf16>, vector<8x32xf32> -> vector<8x32xf32>
    %58 = vector.broadcast %54 : vector<1x32xf32> to vector<8x32xf32>
    %59 = arith.addf %57, %58 : vector<8x32xf32>
    %cst_34 = arith.constant 0.000000e+00 : f32
    %60 = vector.broadcast %cst_34 : f32 to vector<8x32xf32>
    %61 = arith.maximumf %59, %60 : vector<8x32xf32>
    %c1_35 = arith.constant 1 : index
    %c0_36 = arith.constant 0 : index
    %c32_37 = arith.constant 32 : index
    %62 = vector.load %arg2[%c1_35, %c0_36, %c32_37] : memref<4x40x128xf32, #tpu.memory_space<vmem>>, vector<1x32x32xf32>
    %63 = vector.shape_cast %62 : vector<1x32x32xf32> to vector<32x32xf32>
    %c1_38 = arith.constant 1 : index
    %c32_39 = arith.constant 32 : index
    %c32_40 = arith.constant 32 : index
    %64 = vector.load %arg2[%c1_38, %c32_39, %c32_40] : memref<4x40x128xf32, #tpu.memory_space<vmem>>, vector<1x1x32xf32>
    %65 = vector.shape_cast %64 : vector<1x1x32xf32> to vector<1x32xf32>
    %66 = arith.truncf %61 : vector<8x32xf32> to vector<8x32xbf16>
    %67 = arith.truncf %63 : vector<32x32xf32> to vector<32x32xbf16>
    %cst_41 = arith.constant dense<0.000000e+00> : vector<8x32xf32>
    %68 = tpu.matmul %66, %67, %cst_41 {dimension_numbers = #tpu.dot_dimension_numbers<[1], [0], [0], [1], [0, 0, 1, 1], [], []>} : vector<8x32xbf16>, vector<32x32xbf16>, vector<8x32xf32> -> vector<8x32xf32>
    %69 = vector.broadcast %65 : vector<1x32xf32> to vector<8x32xf32>
    %70 = arith.addf %68, %69 : vector<8x32xf32>
    %cst_42 = arith.constant 0.000000e+00 : f32
    %71 = vector.broadcast %cst_42 : f32 to vector<8x32xf32>
    %72 = arith.maximumf %70, %71 : vector<8x32xf32>
    %c1_43 = arith.constant 1 : index
    %c0_44 = arith.constant 0 : index
    %c64_45 = arith.constant 64 : index
    %73 = vector.load %arg2[%c1_43, %c0_44, %c64_45] : memref<4x40x128xf32, #tpu.memory_space<vmem>>, vector<1x32x32xf32>
    %74 = vector.shape_cast %73 : vector<1x32x32xf32> to vector<32x32xf32>
    %c1_46 = arith.constant 1 : index
    %c32_47 = arith.constant 32 : index
    %c64_48 = arith.constant 64 : index
    %75 = vector.load %arg2[%c1_46, %c32_47, %c64_48] : memref<4x40x128xf32, #tpu.memory_space<vmem>>, vector<1x1x32xf32>
    %76 = vector.shape_cast %75 : vector<1x1x32xf32> to vector<1x32xf32>
    %77 = arith.truncf %72 : vector<8x32xf32> to vector<8x32xbf16>
    %78 = arith.truncf %74 : vector<32x32xf32> to vector<32x32xbf16>
    %cst_49 = arith.constant dense<0.000000e+00> : vector<8x32xf32>
    %79 = tpu.matmul %77, %78, %cst_49 {dimension_numbers = #tpu.dot_dimension_numbers<[1], [0], [0], [1], [0, 0, 1, 1], [], []>} : vector<8x32xbf16>, vector<32x32xbf16>, vector<8x32xf32> -> vector<8x32xf32>
    %80 = vector.broadcast %76 : vector<1x32xf32> to vector<8x32xf32>
    %81 = arith.addf %79, %80 : vector<8x32xf32>
    %cst_50 = arith.constant 0.000000e+00 : f32
    %82 = vector.broadcast %cst_50 : f32 to vector<8x32xf32>
    %83 = arith.maximumf %81, %82 : vector<8x32xf32>
    %c1_51 = arith.constant 1 : index
    %c0_52 = arith.constant 0 : index
    %c96_53 = arith.constant 96 : index
    %84 = vector.load %arg2[%c1_51, %c0_52, %c96_53] : memref<4x40x128xf32, #tpu.memory_space<vmem>>, vector<1x32x32xf32>
    %85 = vector.shape_cast %84 : vector<1x32x32xf32> to vector<32x32xf32>
    %c1_54 = arith.constant 1 : index
    %c32_55 = arith.constant 32 : index
    %c96_56 = arith.constant 96 : index
    %86 = vector.load %arg2[%c1_54, %c32_55, %c96_56] : memref<4x40x128xf32, #tpu.memory_space<vmem>>, vector<1x1x32xf32>
    %87 = vector.shape_cast %86 : vector<1x1x32xf32> to vector<1x32xf32>
    %88 = arith.truncf %83 : vector<8x32xf32> to vector<8x32xbf16>
    %89 = arith.truncf %85 : vector<32x32xf32> to vector<32x32xbf16>
    %cst_57 = arith.constant dense<0.000000e+00> : vector<8x32xf32>
    %90 = tpu.matmul %88, %89, %cst_57 {dimension_numbers = #tpu.dot_dimension_numbers<[1], [0], [0], [1], [0, 0, 1, 1], [], []>} : vector<8x32xbf16>, vector<32x32xbf16>, vector<8x32xf32> -> vector<8x32xf32>
    %91 = vector.broadcast %87 : vector<1x32xf32> to vector<8x32xf32>
    %92 = arith.addf %90, %91 : vector<8x32xf32>
    %93 = vector.extract_strided_slice %92 {offsets = [0, 0], sizes = [8, 16], strides = [1, 1]} : vector<8x32xf32> to vector<8x16xf32>
    %94 = math.tanh %93 : vector<8x16xf32>
    %95 = vector.extract_strided_slice %92 {offsets = [0, 16], sizes = [8, 16], strides = [1, 1]} : vector<8x32xf32> to vector<8x16xf32>
    %96 = math.exp %94 : vector<8x16xf32>
    %97 = arith.mulf %2, %96 : vector<8x16xf32>
    %98 = arith.addf %97, %95 : vector<8x16xf32>
    %c2 = arith.constant 2 : index
    %c0_58 = arith.constant 0 : index
    %c0_59 = arith.constant 0 : index
    %99 = vector.load %arg2[%c2, %c0_58, %c0_59] : memref<4x40x128xf32, #tpu.memory_space<vmem>>, vector<1x16x32xf32>
    %100 = vector.shape_cast %99 : vector<1x16x32xf32> to vector<16x32xf32>
    %c2_60 = arith.constant 2 : index
    %c32_61 = arith.constant 32 : index
    %c0_62 = arith.constant 0 : index
    %101 = vector.load %arg2[%c2_60, %c32_61, %c0_62] : memref<4x40x128xf32, #tpu.memory_space<vmem>>, vector<1x1x32xf32>
    %102 = vector.shape_cast %101 : vector<1x1x32xf32> to vector<1x32xf32>
    %103 = arith.truncf %98 : vector<8x16xf32> to vector<8x16xbf16>
    %104 = arith.truncf %100 : vector<16x32xf32> to vector<16x32xbf16>
    %cst_63 = arith.constant dense<0.000000e+00> : vector<8x32xf32>
    %105 = tpu.matmul %103, %104, %cst_63 {dimension_numbers = #tpu.dot_dimension_numbers<[1], [0], [0], [1], [0, 0, 1, 1], [], []>} : vector<8x16xbf16>, vector<16x32xbf16>, vector<8x32xf32> -> vector<8x32xf32>
    %106 = vector.broadcast %102 : vector<1x32xf32> to vector<8x32xf32>
    %107 = arith.addf %105, %106 : vector<8x32xf32>
    %cst_64 = arith.constant 0.000000e+00 : f32
    %108 = vector.broadcast %cst_64 : f32 to vector<8x32xf32>
    %109 = arith.maximumf %107, %108 : vector<8x32xf32>
    %c2_65 = arith.constant 2 : index
    %c0_66 = arith.constant 0 : index
    %c32_67 = arith.constant 32 : index
    %110 = vector.load %arg2[%c2_65, %c0_66, %c32_67] : memref<4x40x128xf32, #tpu.memory_space<vmem>>, vector<1x32x32xf32>
    %111 = vector.shape_cast %110 : vector<1x32x32xf32> to vector<32x32xf32>
    %c2_68 = arith.constant 2 : index
    %c32_69 = arith.constant 32 : index
    %c32_70 = arith.constant 32 : index
    %112 = vector.load %arg2[%c2_68, %c32_69, %c32_70] : memref<4x40x128xf32, #tpu.memory_space<vmem>>, vector<1x1x32xf32>
    %113 = vector.shape_cast %112 : vector<1x1x32xf32> to vector<1x32xf32>
    %114 = arith.truncf %109 : vector<8x32xf32> to vector<8x32xbf16>
    %115 = arith.truncf %111 : vector<32x32xf32> to vector<32x32xbf16>
    %cst_71 = arith.constant dense<0.000000e+00> : vector<8x32xf32>
    %116 = tpu.matmul %114, %115, %cst_71 {dimension_numbers = #tpu.dot_dimension_numbers<[1], [0], [0], [1], [0, 0, 1, 1], [], []>} : vector<8x32xbf16>, vector<32x32xbf16>, vector<8x32xf32> -> vector<8x32xf32>
    %117 = vector.broadcast %113 : vector<1x32xf32> to vector<8x32xf32>
    %118 = arith.addf %116, %117 : vector<8x32xf32>
    %cst_72 = arith.constant 0.000000e+00 : f32
    %119 = vector.broadcast %cst_72 : f32 to vector<8x32xf32>
    %120 = arith.maximumf %118, %119 : vector<8x32xf32>
    %c2_73 = arith.constant 2 : index
    %c0_74 = arith.constant 0 : index
    %c64_75 = arith.constant 64 : index
    %121 = vector.load %arg2[%c2_73, %c0_74, %c64_75] : memref<4x40x128xf32, #tpu.memory_space<vmem>>, vector<1x32x32xf32>
    %122 = vector.shape_cast %121 : vector<1x32x32xf32> to vector<32x32xf32>
    %c2_76 = arith.constant 2 : index
    %c32_77 = arith.constant 32 : index
    %c64_78 = arith.constant 64 : index
    %123 = vector.load %arg2[%c2_76, %c32_77, %c64_78] : memref<4x40x128xf32, #tpu.memory_space<vmem>>, vector<1x1x32xf32>
    %124 = vector.shape_cast %123 : vector<1x1x32xf32> to vector<1x32xf32>
    %125 = arith.truncf %120 : vector<8x32xf32> to vector<8x32xbf16>
    %126 = arith.truncf %122 : vector<32x32xf32> to vector<32x32xbf16>
    %cst_79 = arith.constant dense<0.000000e+00> : vector<8x32xf32>
    %127 = tpu.matmul %125, %126, %cst_79 {dimension_numbers = #tpu.dot_dimension_numbers<[1], [0], [0], [1], [0, 0, 1, 1], [], []>} : vector<8x32xbf16>, vector<32x32xbf16>, vector<8x32xf32> -> vector<8x32xf32>
    %128 = vector.broadcast %124 : vector<1x32xf32> to vector<8x32xf32>
    %129 = arith.addf %127, %128 : vector<8x32xf32>
    %cst_80 = arith.constant 0.000000e+00 : f32
    %130 = vector.broadcast %cst_80 : f32 to vector<8x32xf32>
    %131 = arith.maximumf %129, %130 : vector<8x32xf32>
    %c2_81 = arith.constant 2 : index
    %c0_82 = arith.constant 0 : index
    %c96_83 = arith.constant 96 : index
    %132 = vector.load %arg2[%c2_81, %c0_82, %c96_83] : memref<4x40x128xf32, #tpu.memory_space<vmem>>, vector<1x32x32xf32>
    %133 = vector.shape_cast %132 : vector<1x32x32xf32> to vector<32x32xf32>
    %c2_84 = arith.constant 2 : index
    %c32_85 = arith.constant 32 : index
    %c96_86 = arith.constant 96 : index
    %134 = vector.load %arg2[%c2_84, %c32_85, %c96_86] : memref<4x40x128xf32, #tpu.memory_space<vmem>>, vector<1x1x32xf32>
    %135 = vector.shape_cast %134 : vector<1x1x32xf32> to vector<1x32xf32>
    %136 = arith.truncf %131 : vector<8x32xf32> to vector<8x32xbf16>
    %137 = arith.truncf %133 : vector<32x32xf32> to vector<32x32xbf16>
    %cst_87 = arith.constant dense<0.000000e+00> : vector<8x32xf32>
    %138 = tpu.matmul %136, %137, %cst_87 {dimension_numbers = #tpu.dot_dimension_numbers<[1], [0], [0], [1], [0, 0, 1, 1], [], []>} : vector<8x32xbf16>, vector<32x32xbf16>, vector<8x32xf32> -> vector<8x32xf32>
    %139 = vector.broadcast %135 : vector<1x32xf32> to vector<8x32xf32>
    %140 = arith.addf %138, %139 : vector<8x32xf32>
    %141 = vector.extract_strided_slice %140 {offsets = [0, 0], sizes = [8, 16], strides = [1, 1]} : vector<8x32xf32> to vector<8x16xf32>
    %142 = math.tanh %141 : vector<8x16xf32>
    %143 = vector.extract_strided_slice %140 {offsets = [0, 16], sizes = [8, 16], strides = [1, 1]} : vector<8x32xf32> to vector<8x16xf32>
    %144 = math.exp %142 : vector<8x16xf32>
    %145 = arith.mulf %50, %144 : vector<8x16xf32>
    %146 = arith.addf %145, %143 : vector<8x16xf32>
    %c3 = arith.constant 3 : index
    %c0_88 = arith.constant 0 : index
    %c0_89 = arith.constant 0 : index
    %147 = vector.load %arg2[%c3, %c0_88, %c0_89] : memref<4x40x128xf32, #tpu.memory_space<vmem>>, vector<1x16x32xf32>
    %148 = vector.shape_cast %147 : vector<1x16x32xf32> to vector<16x32xf32>
    %c3_90 = arith.constant 3 : index
    %c32_91 = arith.constant 32 : index
    %c0_92 = arith.constant 0 : index
    %149 = vector.load %arg2[%c3_90, %c32_91, %c0_92] : memref<4x40x128xf32, #tpu.memory_space<vmem>>, vector<1x1x32xf32>
    %150 = vector.shape_cast %149 : vector<1x1x32xf32> to vector<1x32xf32>
    %151 = arith.truncf %146 : vector<8x16xf32> to vector<8x16xbf16>
    %152 = arith.truncf %148 : vector<16x32xf32> to vector<16x32xbf16>
    %cst_93 = arith.constant dense<0.000000e+00> : vector<8x32xf32>
    %153 = tpu.matmul %151, %152, %cst_93 {dimension_numbers = #tpu.dot_dimension_numbers<[1], [0], [0], [1], [0, 0, 1, 1], [], []>} : vector<8x16xbf16>, vector<16x32xbf16>, vector<8x32xf32> -> vector<8x32xf32>
    %154 = vector.broadcast %150 : vector<1x32xf32> to vector<8x32xf32>
    %155 = arith.addf %153, %154 : vector<8x32xf32>
    %cst_94 = arith.constant 0.000000e+00 : f32
    %156 = vector.broadcast %cst_94 : f32 to vector<8x32xf32>
    %157 = arith.maximumf %155, %156 : vector<8x32xf32>
    %c3_95 = arith.constant 3 : index
    %c0_96 = arith.constant 0 : index
    %c32_97 = arith.constant 32 : index
    %158 = vector.load %arg2[%c3_95, %c0_96, %c32_97] : memref<4x40x128xf32, #tpu.memory_space<vmem>>, vector<1x32x32xf32>
    %159 = vector.shape_cast %158 : vector<1x32x32xf32> to vector<32x32xf32>
    %c3_98 = arith.constant 3 : index
    %c32_99 = arith.constant 32 : index
    %c32_100 = arith.constant 32 : index
    %160 = vector.load %arg2[%c3_98, %c32_99, %c32_100] : memref<4x40x128xf32, #tpu.memory_space<vmem>>, vector<1x1x32xf32>
    %161 = vector.shape_cast %160 : vector<1x1x32xf32> to vector<1x32xf32>
    %162 = arith.truncf %157 : vector<8x32xf32> to vector<8x32xbf16>
    %163 = arith.truncf %159 : vector<32x32xf32> to vector<32x32xbf16>
    %cst_101 = arith.constant dense<0.000000e+00> : vector<8x32xf32>
    %164 = tpu.matmul %162, %163, %cst_101 {dimension_numbers = #tpu.dot_dimension_numbers<[1], [0], [0], [1], [0, 0, 1, 1], [], []>} : vector<8x32xbf16>, vector<32x32xbf16>, vector<8x32xf32> -> vector<8x32xf32>
    %165 = vector.broadcast %161 : vector<1x32xf32> to vector<8x32xf32>
    %166 = arith.addf %164, %165 : vector<8x32xf32>
    %cst_102 = arith.constant 0.000000e+00 : f32
    %167 = vector.broadcast %cst_102 : f32 to vector<8x32xf32>
    %168 = arith.maximumf %166, %167 : vector<8x32xf32>
    %c3_103 = arith.constant 3 : index
    %c0_104 = arith.constant 0 : index
    %c64_105 = arith.constant 64 : index
    %169 = vector.load %arg2[%c3_103, %c0_104, %c64_105] : memref<4x40x128xf32, #tpu.memory_space<vmem>>, vector<1x32x32xf32>
    %170 = vector.shape_cast %169 : vector<1x32x32xf32> to vector<32x32xf32>
    %c3_106 = arith.constant 3 : index
    %c32_107 = arith.constant 32 : index
    %c64_108 = arith.constant 64 : index
    %171 = vector.load %arg2[%c3_106, %c32_107, %c64_108] : memref<4x40x128xf32, #tpu.memory_space<vmem>>, vector<1x1x32xf32>
    %172 = vector.shape_cast %171 : vector<1x1x32xf32> to vector<1x32xf32>
    %173 = arith.truncf %168 : vector<8x32xf32> to vector<8x32xbf16>
    %174 = arith.truncf %170 : vector<32x32xf32> to vector<32x32xbf16>
    %cst_109 = arith.constant dense<0.000000e+00> : vector<8x32xf32>
    %175 = tpu.matmul %173, %174, %cst_109 {dimension_numbers = #tpu.dot_dimension_numbers<[1], [0], [0], [1], [0, 0, 1, 1], [], []>} : vector<8x32xbf16>, vector<32x32xbf16>, vector<8x32xf32> -> vector<8x32xf32>
    %176 = vector.broadcast %172 : vector<1x32xf32> to vector<8x32xf32>
    %177 = arith.addf %175, %176 : vector<8x32xf32>
    %cst_110 = arith.constant 0.000000e+00 : f32
    %178 = vector.broadcast %cst_110 : f32 to vector<8x32xf32>
    %179 = arith.maximumf %177, %178 : vector<8x32xf32>
    %c3_111 = arith.constant 3 : index
    %c0_112 = arith.constant 0 : index
    %c96_113 = arith.constant 96 : index
    %180 = vector.load %arg2[%c3_111, %c0_112, %c96_113] : memref<4x40x128xf32, #tpu.memory_space<vmem>>, vector<1x32x32xf32>
    %181 = vector.shape_cast %180 : vector<1x32x32xf32> to vector<32x32xf32>
    %c3_114 = arith.constant 3 : index
    %c32_115 = arith.constant 32 : index
    %c96_116 = arith.constant 96 : index
    %182 = vector.load %arg2[%c3_114, %c32_115, %c96_116] : memref<4x40x128xf32, #tpu.memory_space<vmem>>, vector<1x1x32xf32>
    %183 = vector.shape_cast %182 : vector<1x1x32xf32> to vector<1x32xf32>
    %184 = arith.truncf %179 : vector<8x32xf32> to vector<8x32xbf16>
    %185 = arith.truncf %181 : vector<32x32xf32> to vector<32x32xbf16>
    %cst_117 = arith.constant dense<0.000000e+00> : vector<8x32xf32>
    %186 = tpu.matmul %184, %185, %cst_117 {dimension_numbers = #tpu.dot_dimension_numbers<[1], [0], [0], [1], [0, 0, 1, 1], [], []>} : vector<8x32xbf16>, vector<32x32xbf16>, vector<8x32xf32> -> vector<8x32xf32>
    %187 = vector.broadcast %183 : vector<1x32xf32> to vector<8x32xf32>
    %188 = arith.addf %186, %187 : vector<8x32xf32>
    %189 = vector.extract_strided_slice %188 {offsets = [0, 0], sizes = [8, 16], strides = [1, 1]} : vector<8x32xf32> to vector<8x16xf32>
    %190 = math.tanh %189 : vector<8x16xf32>
    %191 = vector.extract_strided_slice %188 {offsets = [0, 16], sizes = [8, 16], strides = [1, 1]} : vector<8x32xf32> to vector<8x16xf32>
    %192 = math.exp %190 : vector<8x16xf32>
    %193 = arith.mulf %98, %192 : vector<8x16xf32>
    %194 = arith.addf %193, %191 : vector<8x16xf32>
    %195 = tpu.concatenate %146, %194 in 1 : vector<8x16xf32>, vector<8x16xf32> -> vector<8x32xf32>
    %c0_118 = arith.constant 0 : index
    %c33 = arith.constant 33 : index
    %c0_119 = arith.constant 0 : index
    %196 = vector.load %arg2[%c0_118, %c33, %c0_119] : memref<4x40x128xf32, #tpu.memory_space<vmem>>, vector<1x1x32xf32>
    %197 = vector.shape_cast %196 : vector<1x1x32xf32> to vector<1x32xf32>
    %198 = math.exp %197 : vector<1x32xf32>
    %199 = vector.broadcast %198 : vector<1x32xf32> to vector<8x32xf32>
    %200 = arith.mulf %199, %195 : vector<8x32xf32>
    %201 = arith.mulf %200, %200 : vector<8x32xf32>
    %cst_120 = arith.constant 1.83787704 : f32
    %202 = vector.broadcast %cst_120 : f32 to vector<8x32xf32>
    %203 = arith.addf %202, %201 : vector<8x32xf32>
    %cst_121 = arith.constant -5.000000e-01 : f32
    %204 = vector.broadcast %cst_121 : f32 to vector<8x32xf32>
    %205 = arith.mulf %204, %203 : vector<8x32xf32>
    %cst_122 = arith.constant dense<0.000000e+00> : vector<8xf32>
    %206 = vector.multi_reduction <add>, %205, %cst_122 [1] : vector<8x32xf32> to vector<8xf32>
    %207 = vector.shape_cast %206 : vector<8xf32> to vector<8x1xf32>
    %cst_123 = arith.constant dense<0.000000e+00> : vector<1xf32>
    %208 = vector.multi_reduction <add>, %197, %cst_123 [1] : vector<1x32xf32> to vector<1xf32>
    %209 = vector.shape_cast %208 : vector<1xf32> to vector<1x1xf32>
    %210 = vector.broadcast %209 : vector<1x1xf32> to vector<8x1xf32>
    %211 = arith.addf %207, %210 : vector<8x1xf32>
    %cst_124 = arith.constant 0.000000e+00 : f32
    %212 = vector.broadcast %cst_124 : f32 to vector<8x1xf32>
    %213 = arith.subf %212, %211 : vector<8x1xf32>
    %c0_125 = arith.constant 0 : index
    %c0_126 = arith.constant 0 : index
    %214 = vector.load %arg3[%c0_125, %c0_126] : memref<8x1xf32, #tpu.memory_space<vmem>>, vector<8x1xf32>
    tpu.vector_store %arg3[%c0_125, %c0_126], %213 {strides = array<i32>} : memref<8x1xf32, #tpu.memory_space<vmem>>, vector<8x1xf32>,
    %c0_127 = arith.constant 0 : index
    %c0_128 = arith.constant 0 : index
    %215 = vector.load %arg4[%c0_127, %c0_128] : memref<8x32xf32, #tpu.memory_space<vmem>>, vector<8x32xf32>
    tpu.vector_store %arg4[%c0_127, %c0_128], %200 {strides = array<i32>} : memref<8x32xf32, #tpu.memory_space<vmem>>, vector<8x32xf32>,
    return
  }
  func.func @transform_0(%arg0: i32) -> (i32, i32) {
    %c0_i32 = arith.constant 0 : i32
    %c0_i32_0 = arith.constant 0 : i32
    return %arg0, %c0_i32 : i32, i32
  }
  func.func @transform_1(%arg0: i32) -> (i32, i32, i32) {
    %c0_i32 = arith.constant 0 : i32
    %c0_i32_0 = arith.constant 0 : i32
    %c0_i32_1 = arith.constant 0 : i32
    %c0_i32_2 = arith.constant 0 : i32
    return %c0_i32, %c0_i32_0, %c0_i32_1 : i32, i32, i32
  }
  func.func @transform_2(%arg0: i32) -> (i32, i32) {
    %c0_i32 = arith.constant 0 : i32
    %c0_i32_0 = arith.constant 0 : i32
    return %arg0, %c0_i32 : i32, i32
  }
  func.func @transform_3(%arg0: i32) -> (i32, i32) {
    %c0_i32 = arith.constant 0 : i32
    %c0_i32_0 = arith.constant 0 : i32
    return %arg0, %c0_i32 : i32, i32
  }
}

</mosaic_0001>

<bundles_post_ra>
// kernel: tpu_custom_call.1
= control target key start
LH: loop header
LB: loop body
LE: loop exit
PB: predicated region body
PF: predicated region fallthrough
CT: control target
= control target key end

     0   :  { %9 = vsyncpa [#allocation3], 0  ;;  %s1366_s0 = inlined_call_operand.hbm [shape: f32[16,32], index: 0, kind: input, shape index: {}]   ;;  %s1367_s1 = inlined_call_operand.hbm [shape: f32[4,40,128], index: 1, kind: input, shape index: {}]   ;;  %s1368_s2 = inlined_call_operand.vmem [shape: f32[16,1], index: 2, kind: output, shape index: {0}]   ;;  %s1369_s3 = inlined_call_operand.hbm [shape: f32[16,32], index: 3, kind: output, shape index: {1}]  }
   0x1   :  { %11 = vsyncpa [#allocation3 + $0x1], 0 }
   0x2   :  { %12 = vsyncpa [#allocation6], 0 }
   0x3   :  { %13 = vsyncpa [#allocation4], 0 }
   0x4   :  { %15 = vsyncpa [#allocation4 + $0x1], 0  ;;  %s1139_s12 = smov 0   ;;  %s1141_s13 = smov 0  }
   0x5   :  { %s1143_s14 = smov 0   ;;  %s1145_s15 = smov 0  }
   0x6 LB: > { %s136_s18 = sshll.u32 %s1367_s1, 4  ;;  %s1163_s19 = sadd.s32 4294967295, %s1109_s15   ;;  %s1109_s15 = sphi %s1145_s15, %s1379_s15   ;;  %s1105_s14 = sphi %s1143_s14, %s1378_s14   ;;  %s1101_s13 = sphi %s1141_s13, %s1377_s13   ;;  %s1097_s12 = sphi %s1139_s12, %s1376_s12   ;;  %s137_s18 = int_to_ptr.hbm [resolvable:$true] %s136_s18 }
   0x7   : > { %p863_p0 = scmp.ge.s32.totalorder %s1109_s15, 1  ;;  %p42_p1 = scmp.eq.s32.totalorder %s1163_s19, 0 }
   0x8   : > { %p125_p2 = scmp.lt.s32.totalorder %s1109_s15, 3  ;;  %s1111_s21 = smov [#allocation5]  }
   0x9   : > { %s138_s22 = sshll.u32 %s1111_s21, 4  ;;  %s1112_s23 = smov 128   ;;  %s139_s22 = int_to_ptr.vmem [resolvable:$true] %s138_s22 }
   0xa   : > { %p1168_p3 = pnand %p863_p0, %p125_p2  ;;  %s1113_s24 = smov 8  }
   0xb   : > { %s862_s25 = sadd.s32 4294967294, %s1109_s15   ;;  %s1179_s26 = sadd.s32 1, %s1109_s15  }
   0xc   : > { %p901_p4 = pneg %p1168_p3  ;;  %s28_s27 = sadd.s32 1, %s1105_s14 }
   0xd   : > { %s25_s28 = ssub.s32 %s1109_s15, %s1179_s26  ;;  %p35_p7 = scmp.ne.s32.totalorder %s1105_s14, %s1101_s13 }
   0xe   : > { %p902_p6 = pnand %p901_p4, %p42_p1  ;;  %p26_p8 = scmp.eq.s32.totalorder %s25_s28, 0 }
   0xf   : > { %p36_p9 = scmp.eq.s32.totalorder %s1109_s15, 0  ;;  %p41_p10 = scmp.ne.s32.totalorder %s1101_s13, %s1097_s12 }
  0x10   : > { %904 = dma.hbm_to_vmem [thread:$0]  (!%p902_p6), %s137_s18, 2560, %s139_s22, [#allocation6], %s1112_s23, %s1112_s23, %s1113_s24  }
  0x11   : > { %p112_p11 = scmp.eq.s32.totalorder %s1163_s19, 1  ;;  %p1195_p12 = por %p42_p1, %p41_p10 }
  0x12   : > { %s1191_s29 = scalar_select %p26_p8, %s1105_s14, %s28_s27  }
  0x13   : > { %p1199_p13 = por %p112_p11, %p35_p7  ;;  %p118_p0 = scmp.eq.s32.totalorder %s862_s25, 1 }
  0x14   : > { %p37_p2 = por %p36_p9, %p35_p7  ;;  %s152_s5 = sand.u32 1, %s1105_s14  }
  0x15   : > { %p1204_p4 = por %p118_p0, %p41_p10  ;;  %p914_p6 = scmp.lt.s32.totalorder %s1109_s15, 2 }
  0x16   : > { %s866_s7 = sshll.u32 %s152_s5, 3  ;;  %s867_s8 = sshll.u32 %s1109_s15, 3 }
  0x17   : > { %s160_s11 = scalar_lea.hbm %s1366_s0, %s867_s8  ;;  %s156_s17 = scalar_lea.vmem [#allocation2], %s866_s7 }
  0x18   : > { %s162_s16 = sshll.u32 %s160_s11, 4  ;;  %s164_s18 = sshll.u32 %s156_s17, 4  ;;  %s163_s16 = int_to_ptr.hbm [resolvable:$true] %s162_s16  ;;  %s165_s18 = int_to_ptr.vmem [resolvable:$true] %s164_s18 }
  0x19   : > { %p1213_p8 = pnand %p914_p6, %p37_p2  ;;  %s153_s22 = scalar_lea.sflag [#allocation3], %s152_s5 }
  0x1a   : > { %s1009_s23 = sshra.s32 %s163_s16, 4  ;;  %s1016_s28 = scalar_lea.hbm %s1366_s0, 16  ;;  %s1010_s23 = int_to_ptr.hbm [resolvable:$true] %s1009_s23 }
  0x1b   : > { %s1011_s24 = scalar_lea.hbm %s1010_s23, 8  ;;  %p1013_p9 = pneg %p1213_p8 }
  0x1c   : > { %p1012_p7 = scmp.ne.s32.totalorder %s1010_s23, %s1011_s24  ;;  %p1017_p0 = scmp.lt.s32.totalorder %s1010_s23, %s1366_s0 }
  0x1d   : > { %p1018_p2 = scmp.lt.s32.totalorder %s1016_s28, %s1011_s24 }
  0x1e   : > { %p1014_p10 = pnand %p1013_p9, %p1012_p7 }
  0x1f   : > { %p1019_p6 = por %p1018_p2, %p1017_p0 }
  0x20   : > { %p1015_p11 = pneg %p1014_p10 }
  0x22   : > { %p1020_p5 = pnand %p1019_p6, %p1015_p11 }
  0x24   : > { %1023 = shalt.err (!%p1020_p5)
}
  0x25   : > { %908 = dma.hbm_to_vmem [thread:$0]  (!%p1213_p8), %s163_s16, 128, %s165_s18, %s153_s22  }
  0x26   : > { %173 = sbr.rel (%p1168_p3) target bundleno = 3016 (0xbc8), region = 28  ;;  %s1230_s5 = sand.u32 (!%p1168_p3), 1, %s1101_s13  }
  0x27   : > { %s869_s9 = sshll.u32 (!%p1168_p3), %s1230_s5, 3  ;;  %s176_s10 = scalar_lea.sflag (!%p1168_p3), [#allocation3], %s1230_s5 }
  0x28   : > { %s179_s11 = scalar_lea.vmem (!%p1168_p3), [#allocation2], %s869_s9 }
  0x2b   : > { %1084 = dma.done.wait (%p1195_p12), %s176_s10, 128  }
  0x2c   : > { %1086 = vsyncadd (%p1195_p12), %s176_s10, 4294967168 }
  0x2d   : > { %1088 = dma.done.wait (%p42_p1), [#allocation6], 2560  }
  0x2e   : > { %1090 = vsyncadd (%p42_p1), [#allocation6], 4294964736  ;;  %v1244_v0 = vld [vmem:[%s179_s11] sm:$0xff]  ;;  %v218_v1 = vld [vmem:[#allocation5] sm:$0xff]  ;;  %s1114_s20 = smov 112   ;;  %s1115_s30 = smov 96  }
  0x2f   : > { %v219_v2 = vld [vmem:[#allocation5 + $0x8] sm:$0xff]  ;;  %v221_v3 = vpack.c.bf16 %v1244_v0, %v1244_v0  ;;  %v247_v5 = vld [vmem:[#allocation5 + $0x10] sm:$0xff]  ;;  %v248_v6 = vld [vmem:[#allocation5 + $0x18] sm:$0xff]  ;;  %vm227_vm0 = vcmask 130048   ;;  %s1116_s16 = smov 64   ;;  %vm264_vm1 = vcmask 261120  }
  0x30   : > { %v222_v4 = vpack.c.bf16 %v219_v2, %v218_v1  ;;  %v251_v7 = vpack.c.bf16 %v248_v6, %v247_v5  ;;  %v957_v9 = vld [vmem:[#allocation5 + $0x20] ss:$0 sm:$0xff]  ;;  %s1117_s17 = smov 32   ;;  %v345_v33 = vld [vmem:[#allocation5 + $0x28] sm:$0xff]  ;;  %v346_v34 = vld [vmem:[#allocation5 + $0x30] sm:$0xff]  ;;  %s1118_s18 = smov 16  }
  0x31   : > { %225 = vrot.lane.b32.xlu0 %v221_v3, %s1114_s20  ;;  %261 = vrot.lane.b32.xlu2 %v957_v9, %s1115_s30  ;;  %v349_v35 = vpack.c.bf16 %v346_v34, %v345_v33  ;;  %v370_v40 = vld [vmem:[#allocation5 + $0x38] sm:$0xff]  ;;  %v371_v41 = vld [vmem:[#allocation5 + $0x40] sm:$0xff]  ;;  %v958_v50 = vld [vmem:[#allocation5 + $0x48] ss:$0 sm:$0xff]  ;;  %vm725_vm2 = vcmask 253952   ;;  %s890_s21 = sshll.u32 %s1163_s19, 3 }
  0x32   : > { %238 = vmatpush.bf16.msra.mxu0 %v222_v4  ;;  %254 = vrot.lane.b32.xlu1 %v222_v4, %s1115_s30  ;;  %v374_v42 = vpack.c.bf16 %v371_v41, %v370_v40  ;;  %s753_s24 = scalar_lea.hbm %s1369_s3, %s890_s21  ;;  %s211_s25 = scalar_lea.vmem [#allocation7], %s869_s9 }
  0x33   : > { %s755_s27 = sshll.u32 %s211_s25, 4  ;;  %s757_s28 = sshll.u32 %s753_s24, 4  ;;  %s756_s27 = int_to_ptr.vmem [resolvable:$true] %s755_s27  ;;  %s758_s28 = int_to_ptr.hbm [resolvable:$true] %s757_s28 }
  0x34   : > { %s740_s7 = scalar_lea.sflag [#allocation4], %s1230_s5  ;;  %s1053_s8 = sshra.s32 %s758_s28, 4  ;;  %s1054_s8 = int_to_ptr.hbm [resolvable:$true] %s1053_s8 }
  0x35   : > { %s1055_s10 = scalar_lea.hbm %s1054_s8, 8  ;;  %s1059_s9 = scalar_lea.hbm %s1369_s3, 16 }
  0x36   : > { %361 = vmatpush.bf16.msrb.mxu0 %v349_v35  ;;  %p1056_p1 = scmp.ne.s32.totalorder %s1054_s8, %s1055_s10  ;;  %p1060_p12 = scmp.lt.s32.totalorder %s1054_s8, %s1369_s3 }
  0x37   : > { %p1061_p8 = scmp.lt.s32.totalorder %s1059_s9, %s1055_s10 }
  0x38   : > { %p1057_p3 = pnand %p1056_p1, %p1199_p13 }
  0x39   : > { %256 = vrot.lane.b32.xlu0 %v251_v7, %s1115_s30  ;;  %283 = vrot.lane.b32.xlu2 %v222_v4, %s1116_s16  ;;  %p1062_p7 = por %p1061_p8, %p1060_p12 }
  0x3a   : > { %285 = vrot.lane.b32.xlu1 %v251_v7, %s1116_s16  ;;  %p1058_p5 = pneg %p1057_p3 }
  0x3c   : > { %p1063_p9 = pnand %p1062_p7, %p1058_p5 }
  0x41   : > { %312 = vrot.lane.b32.xlu0 %v251_v7, %s1117_s17  ;;  %310 = vrot.lane.b32.xlu2 %v222_v4, %s1117_s17 }
  0x42   : > { %289 = vrot.lane.b32.xlu1 %v957_v9, %s1116_s16 }
  0x49   : > { %316 = vrot.lane.b32.xlu0 %v957_v9, %s1117_s17  ;;  %379 = vrot.lane.b32.xlu2 %v374_v42, %s1115_s30 }
  0x51   : > { %377 = vrot.lane.b32.xlu0 %v349_v35, %s1115_s30  ;;  %384 = vrot.lane.b32.xlu2 %v958_v50, %s1115_s30 }
  0x59   : > { %405 = vrot.lane.b32.xlu0 %v349_v35, %s1116_s16  ;;  %411 = vrot.lane.b32.xlu2 %v958_v50, %s1116_s16 }
  0x61   : > { %432 = vrot.lane.b32.xlu0 %v349_v35, %s1117_s17 }
  0x8b   : > { %v262_v18 = vpop.permute.xlu2 %261 }
  0x93   : > { %v284_v19 = vpop.permute.xlu2 %283 }
  0x9b   : > { %v311_v26 = vpop.permute.xlu2 %310 }
  0xa3   : > { %v226_v8 = vpop.permute.xlu0 %225  ;;  %v380_v51 = vpop.permute.xlu2 %379 }
  0xa4   : > { %873 = vmatmul.msk.bf16.vlgmr.msra.gmra.mxu0 %vm227_vm0, %v226_v8  ;;  %v255_v11 = vpop.permute.xlu1 %254 }
  0xab   : > { %v257_v10 = vpop.permute.xlu0 %256  ;;  %v385_v62 = vpop.permute.xlu2 %384 }
  0xac   : > { %274 = vmatpush.bf16.msra.mxu1 %v257_v10  ;;  %v286_v12 = vpop.permute.xlu1 %285 }
  0xad   : > { %301 = vmatpush.bf16.msra.mxu2 %v286_v12 }
  0xb0   : > { %275 = vmatpush.bf16.msra.mxu1 %v255_v11 }
  0xb1   : > { %302 = vmatpush.bf16.msra.mxu2 %v284_v19  ;;  %v468_v19 = vld [vmem:[#allocation5 + $0x58] sm:$0xff] }
  0xb3   : > { %v313_v20 = vpop.permute.xlu0 %312  ;;  %v412_v5 = vpop.permute.xlu2 %411 }
  0xb4   : > { %328 = vmatpush.bf16.msra.mxu3 %v313_v20  ;;  %v290_v27 = vpop.permute.xlu1 %289  ;;  %396 = vmatpush.bf16.msrb.mxu1 %v380_v51 }
  0xb8   : > { %329 = vmatpush.bf16.msra.mxu3 %v311_v26  ;;  %v496_v26 = vld [vmem:[#allocation5 + $0x68] sm:$0xff] }
  0xbb   : > { %v317_v36 = vpop.permute.xlu0 %316 }
  0xc3   : > { %v378_v52 = vpop.permute.xlu0 %377 }
  0xc4   : > { %397 = vmatpush.bf16.msrb.mxu1 %v378_v52 }
  0xcb   : > { %v406_v54 = vpop.permute.xlu0 %405 }
  0xd3   : > { %v433_v61 = vpop.permute.xlu0 %432 }
 0x121   : > { %v240_v13 = vpop.f32.mrf.mxu0 }
 0x122   : > { %v241_v14 = vadd.f32 %v957_v9, %v240_v13 }
 0x124   : > { %v244_v15 = vmax.f32 %v241_v14, 0.0 }
 0x126   : > { %v249_v16 = vpack.c.bf16 %v244_v15, %v244_v15 }
 0x128   : > { %874 = vmatmul.msk.bf16.vlgmr.msra.gmra.mxu1 %vm264_vm1, %v249_v16 }
 0x129   : > { %v242_v17 = vpop.f32.mrf.mxu0 }
 0x1a5   : > { %v277_v21 = vpop.f32.mrf.mxu1 }
 0x1a6   : > { %v278_v22 = vadd.f32 %v277_v21, %v262_v18  ;;  %v467_v18 = vld [vmem:[#allocation5 + $0x50] sm:$0xff] }
 0x1a7   : > { %v471_v20 = vpack.c.bf16 %v468_v19, %v467_v18 }
 0x1a8   : > { %v281_v23 = vmax.f32 %v278_v22, 0.0 }
 0x1a9   : > { %486 = vmatpush.bf16.msra.mxu0 %v471_v20 }
 0x1aa   : > { %v282_v24 = vpack.c.bf16 %v281_v23, %v281_v23 }
 0x1ac   : > { %875 = vmatmul.msk.bf16.vlgmr.msra.gmra.mxu2 %vm264_vm1, %v282_v24 }
 0x1ad   : > { %v279_v25 = vpop.f32.mrf.mxu1 }
 0x1ae   : > { %v495_v25 = vld [vmem:[#allocation5 + $0x60] sm:$0xff] }
 0x22f   : > { %v304_v28 = vpop.f32.mrf.mxu2 }
 0x230   : > { %v305_v29 = vadd.f32 %v304_v28, %v290_v27  ;;  %v499_v27 = vpack.c.bf16 %v496_v26, %v495_v25 }
 0x232   : > { %v308_v30 = vmax.f32 %v305_v29, 0.0 }
 0x234   : > { %v309_v31 = vpack.c.bf16 %v308_v30, %v308_v30 }
 0x236   : > { %876 = vmatmul.msk.bf16.vlgmr.msra.gmra.mxu3 %vm264_vm1, %v309_v31 }
 0x237   : > { %v306_v32 = vpop.f32.mrf.mxu2 }
 0x2b9   : > { %v331_v37 = vpop.f32.mrf.mxu3 }
 0x2ba   : > { %v332_v38 = vadd.f32 %v331_v37, %v317_v36 }
 0x2bc   : > { %340 = vrot.lane.b32.xlu1 %v332_v38, %s1114_s20  ;;  %961 = vtanh.f32 %v332_v38 }
 0x2c1   : > { %v333_v39 = vpop.f32.mrf.mxu3 }
 0x2c2   : > { %v962_v43 = vpop.eup %961 }
 0x2c3   : > { %v336_v44 = vmul.f32 1.442695, %v962_v43 }
 0x2c4   : > { %407 = vrot.lane.b32.xlu1 %v374_v42, %s1116_s16 }
 0x2c5   : > { %963 = vpow2.f32 %v336_v44 }
 0x2cb   : > { %v964_v45 = vpop.eup %963 }
 0x2cc   : > { %434 = vrot.lane.b32.xlu1 %v374_v42, %s1117_s17  ;;  %v338_v46 = vmul.f32 %v964_v45, %v1244_v0 }
 0x2d4   : > { %438 = vrot.lane.b32.xlu1 %v958_v50, %s1117_s17 }
 0x2dc   : > { %504 = vrot.lane.b32.xlu1 %v499_v27, %s1115_s30 }
 0x32e   : > { %v341_v47 = vpop.permute.xlu1 %340 }
 0x32f   : > { %v1270_v48 = vadd.f32 %v341_v47, %v338_v46 }
 0x331   : > { %v348_v49 = vpack.c.bf16 %v1270_v48, %v1270_v48 }
 0x333   : > { %877 = vmatmul.msk.bf16.vlgmr.msrb.gmra.mxu0 %vm227_vm0, %v348_v49 }
 0x336   : > { %v408_v53 = vpop.permute.xlu1 %407 }
 0x337   : > { %423 = vmatpush.bf16.msrb.mxu2 %v408_v53  ;;  %v592_v53 = vld [vmem:[#allocation5 + $0x78] sm:$0xff] }
 0x33b   : > { %424 = vmatpush.bf16.msrb.mxu2 %v406_v54  ;;  %v593_v54 = vld [vmem:[#allocation5 + $0x80] sm:$0xff] }
 0x33e   : > { %v435_v60 = vpop.permute.xlu1 %434 }
 0x33f   : > { %450 = vmatpush.bf16.msrb.mxu3 %v435_v60  ;;  %v617_v60 = vld [vmem:[#allocation5 + $0x88] sm:$0xff] }
 0x343   : > { %451 = vmatpush.bf16.msrb.mxu3 %v433_v61  ;;  %v618_v61 = vld [vmem:[#allocation5 + $0x90] sm:$0xff] }
 0x346   : > { %v439_v11 = vpop.permute.xlu1 %438 }
 0x34e   : > { %v505_v29 = vpop.permute.xlu1 %504 }
 0x34f   : > { %521 = vmatpush.bf16.msra.mxu1 %v505_v29 }
 0x3b0   : > { %v363_v55 = vpop.f32.mrf.mxu0 }
 0x3b1   : > { %v364_v56 = vadd.f32 %v958_v50, %v363_v55  ;;  %v596_v55 = vpack.c.bf16 %v593_v54, %v592_v53 }
 0x3b3   : > { %v367_v57 = vmax.f32 %v364_v56, 0.0  ;;  %608 = vmatpush.bf16.msrb.mxu0 %v596_v55 }
 0x3b5   : > { %v372_v58 = vpack.c.bf16 %v367_v57, %v367_v57 }
 0x3b7   : > { %878 = vmatmul.msk.bf16.vlgmr.msrb.gmra.mxu1 %vm264_vm1, %v372_v58 }
 0x3b8   : > { %v365_v59 = vpop.f32.mrf.mxu0 }
 0x434   : > { %v399_v63 = vpop.f32.mrf.mxu1 }
 0x435   : > { %v400_v1 = vadd.f32 %v399_v63, %v385_v62  ;;  %v621_v62 = vpack.c.bf16 %v618_v61, %v617_v60 }
 0x437   : > { %v403_v2 = vmax.f32 %v400_v1, 0.0 }
 0x439   : > { %v404_v3 = vpack.c.bf16 %v403_v2, %v403_v2 }
 0x43b   : > { %879 = vmatmul.msk.bf16.vlgmr.msrb.gmra.mxu2 %vm264_vm1, %v404_v3 }
 0x43c   : > { %v401_v4 = vpop.f32.mrf.mxu1 }
 0x4be   : > { %v426_v6 = vpop.f32.mrf.mxu2 }
 0x4bf   : > { %v427_v7 = vadd.f32 %v426_v6, %v412_v5 }
 0x4c1   : > { %v430_v8 = vmax.f32 %v427_v7, 0.0  ;;  %v960_v7 = vld [vmem:[#allocation5 + $0x98] ss:$0 sm:$0xff] }
 0x4c3   : > { %v431_v9 = vpack.c.bf16 %v430_v8, %v430_v8 }
 0x4c5   : > { %880 = vmatmul.msk.bf16.vlgmr.msrb.gmra.mxu3 %vm264_vm1, %v431_v9 }
 0x4c6   : > { %v428_v10 = vpop.f32.mrf.mxu2 }
 0x548   : > { %v453_v12 = vpop.f32.mrf.mxu3 }
 0x549   : > { %v454_v13 = vadd.f32 %v453_v12, %v439_v11 }
 0x54b   : > { %965 = vtanh.f32 %v454_v13 }
 0x550   : > { %v455_v14 = vpop.f32.mrf.mxu3 }
 0x551   : > { %v966_v15 = vpop.eup %965 }
 0x552   : > { %v458_v16 = vmul.f32 1.442695, %v966_v15 }
 0x554   : > { %967 = vpow2.f32 %v458_v16 }
 0x55a   : > { %v968_v17 = vpop.eup %967 }
 0x55b   : > { %461 = vrot.lane.b32.xlu2 %v968_v17, %s1118_s18 }
 0x563   : > { %502 = vrot.lane.b32.xlu2 %v471_v20, %s1115_s30 }
 0x56b   : > { %530 = vrot.lane.b32.xlu2 %v471_v20, %s1116_s16 }
 0x573   : > { %557 = vrot.lane.b32.xlu2 %v471_v20, %s1117_s17 }
 0x57b   : > { %626 = vrot.lane.b32.xlu2 %v621_v62, %s1115_s30 }
 0x583   : > { %631 = vrot.lane.b32.xlu2 %v960_v7, %s1115_s30 }
 0x58b   : > { %658 = vrot.lane.b32.xlu2 %v960_v7, %s1116_s16 }
 0x5b5   : > { %v462_v21 = vpop.permute.xlu2 %461 }
 0x5b6   : > { %v464_v22 = vmul.f32 %v462_v21, %v1244_v0  ;;  %v959_v0 = vld [vmem:[#allocation5 + $0x70] ss:$0 sm:$0xff] }
 0x5b7   : > { %509 = vrot.lane.b32.xlu1 %v959_v0, %s1115_s30 }
 0x5b8   : > { %v1286_v23 = vadd.f32 %v464_v22, %v454_v13 }
 0x5ba   : > { %v470_v24 = vpack.c.bf16 %v1286_v23, %v1286_v23 }
 0x5bc   : > { %474 = vrot.lane.b32.xlu0 %v470_v24, %s1114_s20 }
 0x5bd   : > { %v503_v30 = vpop.permute.xlu2 %502 }
 0x5be   : > { %522 = vmatpush.bf16.msra.mxu1 %v503_v30 }
 0x5bf   : > { %536 = vrot.lane.b32.xlu1 %v959_v0, %s1116_s16 }
 0x5c4   : > { %532 = vrot.lane.b32.xlu0 %v499_v27, %s1116_s16 }
 0x5c5   : > { %v531_v32 = vpop.permute.xlu2 %530 }
 0x5cc   : > { %559 = vrot.lane.b32.xlu0 %v499_v27, %s1117_s17 }
 0x5cd   : > { %v558_v39 = vpop.permute.xlu2 %557 }
 0x5d4   : > { %563 = vrot.lane.b32.xlu0 %v959_v0, %s1117_s17 }
 0x5d5   : > { %v627_v8 = vpop.permute.xlu2 %626 }
 0x5d6   : > { %643 = vmatpush.bf16.msrb.mxu1 %v627_v8 }
 0x5dc   : > { %624 = vrot.lane.b32.xlu0 %v596_v55, %s1115_s30 }
 0x5dd   : > { %v632_v18 = vpop.permute.xlu2 %631 }
 0x5e4   : > { %652 = vrot.lane.b32.xlu0 %v596_v55, %s1116_s16 }
 0x5e5   : > { %v659_v25 = vpop.permute.xlu2 %658 }
 0x5ec   : > { %679 = vrot.lane.b32.xlu0 %v596_v55, %s1117_s17 }
 0x629   : > { %v510_v40 = vpop.permute.xlu1 %509 }
 0x62e   : > { %v475_v28 = vpop.permute.xlu0 %474 }
 0x62f   : > { %881 = vmatmul.msk.bf16.vlgmr.msra.gmra.mxu0 %vm227_vm0, %v475_v28 }
 0x631   : > { %v537_v46 = vpop.permute.xlu1 %536 }
 0x636   : > { %v533_v31 = vpop.permute.xlu0 %532 }
 0x637   : > { %548 = vmatpush.bf16.msra.mxu2 %v533_v31 }
 0x63b   : > { %549 = vmatpush.bf16.msra.mxu2 %v531_v32 }
 0x63e   : > { %v560_v38 = vpop.permute.xlu0 %559 }
 0x63f   : > { %575 = vmatpush.bf16.msra.mxu3 %v560_v38 }
 0x643   : > { %576 = vmatpush.bf16.msra.mxu3 %v558_v39 }
 0x646   : > { %v564_v56 = vpop.permute.xlu0 %563 }
 0x64e   : > { %v625_v9 = vpop.permute.xlu0 %624 }
 0x64f   : > { %644 = vmatpush.bf16.msrb.mxu1 %v625_v9 }
 0x656   : > { %v653_v10 = vpop.permute.xlu0 %652 }
 0x65e   : > { %v680_v17 = vpop.permute.xlu0 %679 }
 0x6ac   : > { %v488_v33 = vpop.f32.mrf.mxu0 }
 0x6ad   : > { %v489_v34 = vadd.f32 %v959_v0, %v488_v33 }
 0x6af   : > { %v492_v35 = vmax.f32 %v489_v34, 0.0 }
 0x6b1   : > { %v497_v36 = vpack.c.bf16 %v492_v35, %v492_v35 }
 0x6b3   : > { %882 = vmatmul.msk.bf16.vlgmr.msra.gmra.mxu1 %vm264_vm1, %v497_v36 }
 0x6b4   : > { %v490_v37 = vpop.f32.mrf.mxu0 }
 0x6b5   : > { %v714_v37 = vld [vmem:[#allocation5 + $0x21] sm:$0x1] }
 0x6b6   : > { %v726_v38 = vsel %vm725_vm2, %v714_v37, 0.0  ;;  %v715_v39 = vmul.f32 1.442695, %v714_v37 }
 0x6b7   : > { %727 = vadd.xlane.f32.xlu0 %v726_v38 }
 0x730   : > { %v524_v41 = vpop.f32.mrf.mxu1 }
 0x731   : > { %v525_v42 = vadd.f32 %v524_v41, %v510_v40 }
 0x733   : > { %v528_v43 = vmax.f32 %v525_v42, 0.0 }
 0x735   : > { %v529_v44 = vpack.c.bf16 %v528_v43, %v528_v43 }
 0x737   : > { %883 = vmatmul.msk.bf16.vlgmr.msra.gmra.mxu2 %vm264_vm1, %v529_v44 }
 0x738   : > { %v526_v45 = vpop.f32.mrf.mxu1 }
 0x7ba   : > { %v551_v47 = vpop.f32.mrf.mxu2 }
 0x7bb   : > { %v552_v49 = vadd.f32 %v551_v47, %v537_v46 }
 0x7bd   : > { %v555_v50 = vmax.f32 %v552_v49, 0.0 }
 0x7bf   : > { %v556_v51 = vpack.c.bf16 %v555_v50, %v555_v50 }
 0x7c1   : > { %884 = vmatmul.msk.bf16.vlgmr.msra.gmra.mxu3 %vm264_vm1, %v556_v51 }
 0x7c2   : > { %v553_v52 = vpop.f32.mrf.mxu2 }
 0x844   : > { %v578_v57 = vpop.f32.mrf.mxu3 }
 0x845   : > { %v579_v58 = vadd.f32 %v578_v57, %v564_v56 }
 0x847   : > { %587 = vrot.lane.b32.xlu1 %v579_v58, %s1114_s20  ;;  %969 = vtanh.f32 %v579_v58 }
 0x84c   : > { %v580_v59 = vpop.f32.mrf.mxu3 }
 0x84d   : > { %v970_v63 = vpop.eup %969 }
 0x84e   : > { %v583_v1 = vmul.f32 1.442695, %v970_v63 }
 0x84f   : > { %654 = vrot.lane.b32.xlu1 %v621_v62, %s1116_s16 }
 0x850   : > { %971 = vpow2.f32 %v583_v1 }
 0x856   : > { %v972_v2 = vpop.eup %971 }
 0x857   : > { %681 = vrot.lane.b32.xlu1 %v621_v62, %s1117_s17  ;;  %v585_v3 = vmul.f32 %v972_v2, %v1270_v48 }
 0x85f   : > { %685 = vrot.lane.b32.xlu1 %v960_v7, %s1117_s17 }
 0x8b9   : > { %v588_v4 = vpop.permute.xlu1 %587 }
 0x8ba   : > { %v1309_v5 = vadd.f32 %v588_v4, %v585_v3 }
 0x8bc   : > { %v595_v6 = vpack.c.bf16 %v1309_v5, %v1309_v5 }
 0x8be   : > { %885 = vmatmul.msk.bf16.vlgmr.msrb.gmra.mxu0 %vm227_vm0, %v595_v6 }
 0x8c1   : > { %v655_v48 = vpop.permute.xlu1 %654 }
 0x8c2   : > { %670 = vmatpush.bf16.msrb.mxu2 %v655_v48 }
 0x8c6   : > { %671 = vmatpush.bf16.msrb.mxu2 %v653_v10 }
 0x8c9   : > { %v682_v16 = vpop.permute.xlu1 %681 }
 0x8ca   : > { %697 = vmatpush.bf16.msrb.mxu3 %v682_v16 }
 0x8ce   : > { %698 = vmatpush.bf16.msrb.mxu3 %v680_v17 }
 0x8d1   : > { %v686_v30 = vpop.permute.xlu1 %685 }
 0x93b   : > { %v610_v11 = vpop.f32.mrf.mxu0 }
 0x93c   : > { %v611_v12 = vadd.f32 %v960_v7, %v610_v11 }
 0x93e   : > { %v614_v13 = vmax.f32 %v611_v12, 0.0 }
 0x940   : > { %v619_v14 = vpack.c.bf16 %v614_v13, %v614_v13 }
 0x942   : > { %886 = vmatmul.msk.bf16.vlgmr.msrb.gmra.mxu1 %vm264_vm1, %v619_v14 }
 0x943   : > { %v612_v15 = vpop.f32.mrf.mxu0 }
 0x9bf   : > { %v646_v19 = vpop.f32.mrf.mxu1 }
 0x9c0   : > { %v647_v20 = vadd.f32 %v646_v19, %v632_v18 }
 0x9c2   : > { %v650_v21 = vmax.f32 %v647_v20, 0.0 }
 0x9c4   : > { %v651_v22 = vpack.c.bf16 %v650_v21, %v650_v21 }
 0x9c6   : > { %887 = vmatmul.msk.bf16.vlgmr.msrb.gmra.mxu2 %vm264_vm1, %v651_v22 }
 0x9c7   : > { %v648_v24 = vpop.f32.mrf.mxu1 }
 0xa49   : > { %v673_v26 = vpop.f32.mrf.mxu2 }
 0xa4a   : > { %v674_v27 = vadd.f32 %v673_v26, %v659_v25 }
 0xa4c   : > { %v677_v28 = vmax.f32 %v674_v27, 0.0 }
 0xa4e   : > { %v678_v0 = vpack.c.bf16 %v677_v28, %v677_v28 }
 0xa50   : > { %888 = vmatmul.msk.bf16.vlgmr.msrb.gmra.mxu3 %vm264_vm1, %v678_v0 }
 0xa51   : > { %v675_v29 = vpop.f32.mrf.mxu2 }
 0xad3   : > { %v700_v31 = vpop.f32.mrf.mxu3 }
 0xad4   : > { %v701_v32 = vadd.f32 %v700_v31, %v686_v30 }
 0xad6   : > { %973 = vtanh.f32 %v701_v32 }
 0xadb   : > { %v702_v33 = vpop.f32.mrf.mxu3 }
 0xadc   : > { %v974_v34 = vpop.eup %973 }
 0xadd   : > { %v705_v35 = vmul.f32 1.442695, %v974_v34 }
 0xadf   : > { %975 = vpow2.f32 %v705_v35 }
 0xae0   : > { %977 = vpow2.f32 %v715_v39 }
 0xae5   : > { %v976_v36 = vpop.eup %975 }
 0xae6   : > { %708 = vrot.lane.b32.xlu2 %v976_v36, %s1118_s18  ;;  %v978_v40 = vpop.eup %977 }
 0xae7   : > { %v717_v43 = vperm.slane %v978_v40, 0 }
 0xb40   : > { %v709_v41 = vpop.permute.xlu2 %708 }
 0xb41   : > { %v711_v42 = vmul.f32 %v709_v41, %v1286_v23 }
 0xb43   : > { %v712_v44 = vadd.f32 %v711_v42, %v701_v32 }
 0xb45   : > { %v713_v45 = vsel %vm227_vm0, %v1309_v5, %v712_v44 }
 0xb46   : > { %v718_v46 = vmul.f32 %v717_v43, %v713_v45 }
 0xb48   : > { %v719_v47 = vmul.f32 %v718_v46, %v718_v46  ;;  %734 = vst.msk [vmem:[%s211_s25] sm:$0xff] %vm264_vm1, %v718_v46 }
 0xb49   : > { %1066 = shalt.err (!%p1063_p9)
}
 0xb4a   : > { %899 = dma.vmem_to_hbm [thread:$0]  (%p1199_p13), %s756_s27, 128, %s758_s28, %s740_s7   ;;  %v720_v23 = vadd.f32 1.837877, %v719_v47  ;;  %v728_v51 = vpop.xlane.xlu0 %727  ;;  %vm732_vm3 = vcmask 7168  }
 0xb4b   : > { %p212_p10 = scmp.lt.s32.totalorder %s1163_s19, 1  ;;  %v729_v52 = vperm.slane %v728_v51, 0 }
 0xb4c   : > { %v721_v49 = vmul.f32 -0.5, %v720_v23 }
 0xb4d   : > { %s1381_s19 = smov (!%p212_p10, %s1163_s19), 1 }
 0xb4e   : > { %v722_v50 = vsel %vm264_vm1, %v721_v49, 0.0  ;;  %s872_s5 = sshll.u32 %s1381_s19, 3 }
 0xb4f   : > { %723 = vadd.xlane.f32.xlu1 %v722_v50  ;;  %s215_s21 = scalar_lea.vmem %s1368_s2, %s872_s5 }
 0xbc2   : > { %v724_v53 = vpop.xlane.xlu1 %723 }
 0xbc3   : > { %v730_v54 = vadd.f32 %v729_v52, %v724_v53 }
 0xbc5   : > { %v731_v55 = vsub.f32 0.0, %v730_v54 }
 0xbc7   : > { %733 = vst.msk [vmem:[%s215_s21] sm:$0xff] %vm732_vm3, %v731_v55 }
 0xbc8 PF: > { %s776_s4 = sand.u32 1, %s1097_s12   ;;  %p1375_p13 = scmp.ge.s32.totalorder %s1109_s15, 2 }
 0xbc9   : > { %s777_s22 = scalar_lea.sflag [#allocation4], %s776_s4 }
 0xbca   : > { %p910_p11 = pnand %p1375_p13, %p1204_p4 }
 0xbcc   : > { %p911_p0 = pneg %p910_p11 }
 0xbce   : > { %1092 = dma.done.wait (%p911_p0), %s777_s22, 128  }
 0xbcf   : > { %1094 = vsyncadd (%p911_p0), %s777_s22, 4294967168  ;;  %p18_p2 = scmp.ge.s32.totalorder %s1179_s26, 4   ;;  %s1376_s12 = smov %s1101_s13 }
 0xbd0   : > { %s1377_s13 = smov %s1105_s14  ;;  %s1378_s14 = smov %s1191_s29 }
 0xbd1   : > { %s1379_s15 = smov %s1179_s26  ;;  %20 = sbr.rel (!%p18_p2) target bundleno = 6 (0x6), region = 92 }
 0xbd6   :  { %783 = vsyncpa [#allocation3], 1 }
 0xbd7   :  { %785 = vsyncpa [#allocation3 + $0x1], 1 }
 0xbd8   :  { %786 = vsyncpa [#allocation6], 1 }
 0xbd9   :  { %787 = vsyncpa [#allocation4], 1 }
 0xbda   :  { %789 = vsyncpa [#allocation4 + $0x1], 1 }

</bundles_post_ra>
